<compile_context>
chip_gen: v5e
topology: v5e:2x2
jax: 0.10.0
libtpu: 0.0.40
codegen_flags: <defaults>
</compile_context>

<pallas_src>
import functools

import jax
import jax.numpy as jnp
from jax.experimental import pallas as pl
from jax.experimental.pallas import tpu as pltpu


def _round_up(x, m):
    return ((x + m - 1) // m) * m


def _tensorcores_per_chip():
    """Best-effort TensorCore count per JAX device (v7x/v5p/v4 -> 2, else 1)."""
    try:
        kind = jax.devices()[0].device_kind.lower()
    except Exception:
        return 1
    if "v7" in kind or "v5p" in kind or "v4" in kind:
        return 2
    return 1


def _choose_tiling(n, block_batch, n_cores):
    """Pick (tile_rows, num_tiles, padded_rows) for the batch dimension."""
    n8 = _round_up(max(n, 1), 8)
    # Cap the tile at 8192 rows so the f32 intermediates stay well inside the
    # v7x 64 MiB physical VMEM budget (and the 40 MiB scoped limit below).
    tb_target = max(8, min(_round_up(block_batch, 8), 8192, n8))
    num_tiles = pl.cdiv(n8, tb_target)
    if n_cores > 1 and n8 >= 2 * n_cores * 8:
        # >= 2 grid steps per TensorCore so each core's double-buffered
        # pipeline can hide the input DMA behind compute.
        num_tiles = max(num_tiles, 2 * n_cores)
    # Spread rows (nearly) evenly over the tiles; padding waste is bounded by
    # ~8 rows per tile instead of up to tb-1 rows.
    tb = _round_up(pl.cdiv(n8, num_tiles), 8)
    num_tiles = pl.cdiv(n8, tb)
    return tb, num_tiles, num_tiles * tb


def _linkpred_kernel(xij_ref, w1_ref, b1_ref, w2_ref, b2_ref, w3_ref, b3_ref,
                     o_ref, *, c_in):
    """Fused (x_i * x_j) -> Linear+ReLU -> Linear+ReLU -> Linear(1)+sigmoid."""
    f32 = jnp.float32

    # Single fused stream [tb, 2*c_in]: split the halves with static lane
    # slices and form the product in f32 (v5e has no bf16 VPU path).
    xij = xij_ref[...].astype(f32)
    x = xij[:, :c_in] * xij[:, c_in:]                                    # [tb, c_in]

    h = jnp.dot(x.astype(w1_ref.dtype), w1_ref[...],
                preferred_element_type=f32) + b1_ref[...]                # [tb, hid]
    h = jnp.maximum(h, 0.0)
    # TODO(synk): dropout (training=True) omitted -> identity in eval mode.

    h = jnp.dot(h.astype(w2_ref.dtype), w2_ref[...],
                preferred_element_type=f32) + b2_ref[...]                # [tb, hid]
    h = jnp.maximum(h, 0.0)

    # Final layer (out_channels == 1): contract hid of W3_row [1, hid] with
    # hid of h [tb, hid] -> [1, tb]. Lane-dense result -> unmasked full-lane
    # output stores; the implied transpose of h rides the XLU and is hidden
    # under the input stream at these sizes.
    logits = jax.lax.dot_general(
        w3_ref[...], h,
        dimension_numbers=(((1,), (1,)), ((), ())),
        preferred_element_type=f32) + b3_ref[...]                        # [1, tb]

    o_ref[...] = jax.nn.sigmoid(logits).astype(o_ref.dtype)


@functools.partial(jax.jit, static_argnames=("block_batch", "stream_dtype"))
def link_predictor(x_i, x_j, params, *, block_batch=4096,
                   stream_dtype=jnp.bfloat16):
    """params = (W1, b1, W2, b2, W3, b3); weights stored [in, out], biases [1, out]."""
    w1, b1, w2, b2, w3, b3 = params
    n, c_in = x_i.shape
    hid = w1.shape[1]
    assert x_j.shape == (n, c_in)
    assert w1.shape == (c_in, hid) and w2.shape == (hid, hid)
    assert w3.shape[0] == hid and w3.shape[1] == 1, \
        "kernel specialized to out_channels == 1"

    f32 = jnp.float32
    out_dtype = x_i.dtype

    tb, num_tiles, padded = _choose_tiling(n, block_batch,
                                           _tensorcores_per_chip())

    # One fused stream for both endpoint features (one DMA stream per step at
    # 64/128 lane occupancy). Weights streamed in stream_dtype; biases and the
    # tiny W3 row stay f32. The concat/cast/pad fuse into a single XLA pass.
    xij = jnp.concatenate([x_i, x_j], axis=1).astype(stream_dtype)
    if padded != n:
        xij = jnp.pad(xij, ((0, padded - n), (0, 0)))

    w1s = w1.astype(stream_dtype)
    w2s = w2.astype(stream_dtype)
    b1f = b1.reshape(1, hid).astype(f32)
    b2f = b2.reshape(1, hid).astype(f32)
    w3_row = w3.reshape(1, hid).astype(f32)   # [1, hid] row layout (W3_row @ h^T)
    b3f = b3.reshape(1, 1).astype(f32)

    def resident(shape):
        # Constant index_map -> fetched once, held resident in VMEM.
        return pl.BlockSpec(shape, lambda i: (0, 0))

    in_itm = jnp.dtype(stream_dtype).itemsize
    out_itm = jnp.dtype(out_dtype).itemsize
    cost = pl.CostEstimate(
        flops=int(padded * (c_in + 2 * c_in * hid + 2 * hid * hid + 2 * hid)),
        transcendentals=int(padded),
        bytes_accessed=int(padded * 2 * c_in * in_itm              # fused x_i|x_j
                           + (c_in * hid + hid * hid) * in_itm     # W1, W2
                           + (3 * hid + 1) * 4                     # b1, b2, W3, b3
                           + padded * out_itm),                    # output
    )

    out3 = pl.pallas_call(
        functools.partial(_linkpred_kernel, c_in=c_in),
        out_shape=jax.ShapeDtypeStruct((num_tiles, 1, tb), out_dtype),
        grid_spec=pltpu.PrefetchScalarGridSpec(
            num_scalar_prefetch=0,
            grid=(num_tiles,),
            in_specs=[
                # Streamed fused features. If xprof still shows exposed input
                # DMA on v7x, add pipeline_mode=pl.Buffered(3) here.
                pl.BlockSpec((tb, 2 * c_in), lambda i: (i, 0)),
                resident((c_in, hid)),   # W1
                resident((1, hid)),      # b1
                resident((hid, hid)),    # W2
                resident((1, hid)),      # b2
                resident((1, hid)),      # W3 (row layout)
                resident((1, 1)),        # b3
            ],
            # Lane-dense output: one [1, tb] row per tile.
            out_specs=pl.BlockSpec((None, 1, tb), lambda i: (i, 0, 0)),
        ),
        compiler_params=pltpu.CompilerParams(
            dimension_semantics=("parallel",),
            # Raise v5e's 16 MiB default scoped-VMEM limit so big tiles fit;
            # stays well below v7x's 64 MiB physical VMEM.
            vmem_limit_bytes=40 * 1024 * 1024,
        ),
        cost_estimate=cost,
    )(xij, w1s, b1f, w2s, b2f, w3_row, b3f)

    return out3.reshape(padded, 1)[:n]


def init_params(key, in_channels, hidden_channels, out_channels, num_layers):
    """Deterministic init mirroring torch.nn.Linear shapes (weights stored [in, out])."""
    assert num_layers >= 2
    dims = [in_channels] + [hidden_channels] * (num_layers - 1) + [out_channels]
    params = []
    for idx in range(num_layers):
        fan_in, fan_out = dims[idx], dims[idx + 1]
        key, kw, kb = jax.random.split(key, 3)
        bound = 1.0 / jnp.sqrt(fan_in)
        w = jax.random.uniform(kw, (fan_in, fan_out), jnp.float32, -bound, bound)
        b = jax.random.uniform(kb, (1, fan_out), jnp.float32, -bound, bound)
        params.extend([w, b])
    return tuple(params)


def link_predictor_ref(x_i, x_j, params):
    """Pure-JAX f32 reference for correctness checking."""
    w1, b1, w2, b2, w3, b3 = params
    x = x_i * x_j
    x = jnp.maximum(x @ w1 + b1, 0.0)
    x = jnp.maximum(x @ w2 + b2, 0.0)
    return jax.nn.sigmoid(x @ w3 + b3)


if __name__ == "__main__":
    # Small shapes consistent with the module: num_layers=3, dropout=0.5 (eval).
    # batch deliberately NOT a multiple of the sublane/tile granule so the
    # padding path is exercised.
    batch = 200
    in_channels = 32
    hidden_channels = 32
    out_channels = 1
    num_layers = 3

    key = jax.random.PRNGKey(0)
    k_i, k_j, k_p = jax.random.split(key, 3)
    x_i = jax.random.normal(k_i, (batch, in_channels), jnp.float32)
    x_j = jax.random.normal(k_j, (batch, in_channels), jnp.float32)
    params = init_params(k_p, in_channels, hidden_channels, out_channels, num_layers)

    ref = link_predictor_ref(x_i, x_j, params)

    # Default path: bf16 streaming, large tile(s). Loosened tolerance vs f32 ref.
    out = jax.block_until_ready(link_predictor(x_i, x_j, params))
    assert out.shape == (batch, out_channels)
    assert bool(jnp.all(jnp.isfinite(out)))
    assert jnp.allclose(out, ref, atol=2e-2, rtol=2e-2), "bf16 path mismatch vs reference"

    # f32-streamed path with a small forced tile: exercises the multi-tile grid
    # + 8-row-granule padding path. Tolerance absorbs TPU matmul precision-mode
    # differences vs. the jnp reference.
    out_f32 = jax.block_until_ready(
        link_predictor(x_i, x_j, params, block_batch=64,
                       stream_dtype=jnp.float32))
    assert out_f32.shape == (batch, out_channels)
    assert jnp.allclose(out_f32, ref, atol=3e-3, rtol=3e-3), "f32 path mismatch vs reference"

    print("KERNEL_OK")
</pallas_src>

<mosaic_0001>
module attributes {stable_mosaic.version = 11 : i64} {
  func.func @_linkpred_kernel(%arg0: i32, %arg1: memref<200x64xbf16, #tpu.memory_space<vmem>>, %arg2: memref<32x32xbf16, #tpu.memory_space<vmem>>, %arg3: memref<1x32xf32, #tpu.memory_space<vmem>>, %arg4: memref<32x32xbf16, #tpu.memory_space<vmem>>, %arg5: memref<1x32xf32, #tpu.memory_space<vmem>>, %arg6: memref<1x32xf32, #tpu.memory_space<vmem>>, %arg7: memref<1x1xf32, #tpu.memory_space<vmem>>, %arg8: memref<1x1x200xf32, #tpu.memory_space<vmem>>) attributes {dimension_semantics = [#tpu.dimension_semantics<parallel>], iteration_bounds = array<i64: 1>, scalar_prefetch = 0 : i64, scratch_operands = 0 : i64, tpu.core_type = #tpu.core_type<tc>, window_params = [{transform_indices = @transform_0, window_bounds = array<i64: 200, 64>}, {pipeline_mode = #tpu.pipeline_mode<synchronous>, transform_indices = @transform_1, window_bounds = array<i64: 32, 32>}, {pipeline_mode = #tpu.pipeline_mode<synchronous>, transform_indices = @transform_2, window_bounds = array<i64: 1, 32>}, {pipeline_mode = #tpu.pipeline_mode<synchronous>, transform_indices = @transform_3, window_bounds = array<i64: 32, 32>}, {pipeline_mode = #tpu.pipeline_mode<synchronous>, transform_indices = @transform_4, window_bounds = array<i64: 1, 32>}, {pipeline_mode = #tpu.pipeline_mode<synchronous>, transform_indices = @transform_5, window_bounds = array<i64: 1, 32>}, {pipeline_mode = #tpu.pipeline_mode<synchronous>, transform_indices = @transform_6, window_bounds = array<i64: 1, 1>}, {transform_indices = @transform_7, window_bounds = array<i64: 1, 1, 200>}]} {
    %c0 = arith.constant 0 : index
    %c0_0 = arith.constant 0 : index
    %0 = vector.load %arg1[%c0, %c0_0] : memref<200x64xbf16, #tpu.memory_space<vmem>>, vector<200x64xbf16>
    %1 = arith.extf %0 : vector<200x64xbf16> to vector<200x64xf32>
    %2 = vector.extract_strided_slice %1 {offsets = [0, 0], sizes = [200, 32], strides = [1, 1]} : vector<200x64xf32> to vector<200x32xf32>
    %3 = vector.extract_strided_slice %1 {offsets = [0, 32], sizes = [200, 32], strides = [1, 1]} : vector<200x64xf32> to vector<200x32xf32>
    %4 = arith.mulf %2, %3 : vector<200x32xf32>
    %5 = arith.truncf %4 : vector<200x32xf32> to vector<200x32xbf16>
    %c0_1 = arith.constant 0 : index
    %c0_2 = arith.constant 0 : index
    %6 = vector.load %arg2[%c0_1, %c0_2] : memref<32x32xbf16, #tpu.memory_space<vmem>>, vector<32x32xbf16>
    %cst = arith.constant dense<0.000000e+00> : vector<200x32xf32>
    %7 = tpu.matmul %5, %6, %cst {dimension_numbers = #tpu.dot_dimension_numbers<[1], [0], [0], [1], [0, 0, 1, 1], [], []>} : vector<200x32xbf16>, vector<32x32xbf16>, vector<200x32xf32> -> vector<200x32xf32>
    %c0_3 = arith.constant 0 : index
    %c0_4 = arith.constant 0 : index
    %8 = vector.load %arg3[%c0_3, %c0_4] : memref<1x32xf32, #tpu.memory_space<vmem>>, vector<1x32xf32>
    %9 = vector.broadcast %8 : vector<1x32xf32> to vector<200x32xf32>
    %10 = arith.addf %7, %9 : vector<200x32xf32>
    %cst_5 = arith.constant 0.000000e+00 : f32
    %11 = vector.broadcast %cst_5 : f32 to vector<200x32xf32>
    %12 = arith.maximumf %10, %11 : vector<200x32xf32>
    %13 = arith.truncf %12 : vector<200x32xf32> to vector<200x32xbf16>
    %c0_6 = arith.constant 0 : index
    %c0_7 = arith.constant 0 : index
    %14 = vector.load %arg4[%c0_6, %c0_7] : memref<32x32xbf16, #tpu.memory_space<vmem>>, vector<32x32xbf16>
    %cst_8 = arith.constant dense<0.000000e+00> : vector<200x32xf32>
    %15 = tpu.matmul %13, %14, %cst_8 {dimension_numbers = #tpu.dot_dimension_numbers<[1], [0], [0], [1], [0, 0, 1, 1], [], []>} : vector<200x32xbf16>, vector<32x32xbf16>, vector<200x32xf32> -> vector<200x32xf32>
    %c0_9 = arith.constant 0 : index
    %c0_10 = arith.constant 0 : index
    %16 = vector.load %arg5[%c0_9, %c0_10] : memref<1x32xf32, #tpu.memory_space<vmem>>, vector<1x32xf32>
    %17 = vector.broadcast %16 : vector<1x32xf32> to vector<200x32xf32>
    %18 = arith.addf %15, %17 : vector<200x32xf32>
    %cst_11 = arith.constant 0.000000e+00 : f32
    %19 = vector.broadcast %cst_11 : f32 to vector<200x32xf32>
    %20 = arith.maximumf %18, %19 : vector<200x32xf32>
    %c0_12 = arith.constant 0 : index
    %c0_13 = arith.constant 0 : index
    %21 = vector.load %arg6[%c0_12, %c0_13] : memref<1x32xf32, #tpu.memory_space<vmem>>, vector<1x32xf32>
    %cst_14 = arith.constant dense<0.000000e+00> : vector<1x200xf32>
    %22 = tpu.matmul %21, %20, %cst_14 {dimension_numbers = #tpu.dot_dimension_numbers<[1], [1], [0], [0], [0, 0, 1, 0], [], []>} : vector<1x32xf32>, vector<200x32xf32>, vector<1x200xf32> -> vector<1x200xf32>
    %c0_15 = arith.constant 0 : index
    %c0_16 = arith.constant 0 : index
    %23 = vector.load %arg7[%c0_15, %c0_16] : memref<1x1xf32, #tpu.memory_space<vmem>>, vector<1x1xf32>
    %24 = vector.broadcast %23 : vector<1x1xf32> to vector<1x200xf32>
    %25 = arith.addf %22, %24 : vector<1x200xf32>
    %26 = arith.negf %25 : vector<1x200xf32>
    %27 = math.exp %26 : vector<1x200xf32>
    %cst_17 = arith.constant 1.000000e+00 : f32
    %28 = vector.broadcast %cst_17 : f32 to vector<1x200xf32>
    %29 = arith.addf %28, %27 : vector<1x200xf32>
    %30 = arith.divf %28, %29 : vector<1x200xf32>
    %c0_18 = arith.constant 0 : index
    %c0_19 = arith.constant 0 : index
    %c0_20 = arith.constant 0 : index
    %31 = vector.load %arg8[%c0_18, %c0_19, %c0_20] : memref<1x1x200xf32, #tpu.memory_space<vmem>>, vector<1x1x200xf32>
    %32 = vector.shape_cast %31 : vector<1x1x200xf32> to vector<1x200xf32>
    %33 = vector.shape_cast %30 : vector<1x200xf32> to vector<1x1x200xf32>
    tpu.vector_store %arg8[%c0_18, %c0_19, %c0_20], %33 {strides = array<i32>} : memref<1x1x200xf32, #tpu.memory_space<vmem>>, vector<1x1x200xf32>,
    return
  }
  func.func @transform_0(%arg0: i32) -> (i32, i32) {
    %c0_i32 = arith.constant 0 : i32
    %c0_i32_0 = arith.constant 0 : i32
    return %arg0, %c0_i32 : i32, i32
  }
  func.func @transform_1(%arg0: i32) -> (i32, i32) {
    %c0_i32 = arith.constant 0 : i32
    %c0_i32_0 = arith.constant 0 : i32
    %c0_i32_1 = arith.constant 0 : i32
    return %c0_i32, %c0_i32_0 : i32, i32
  }
  func.func @transform_2(%arg0: i32) -> (i32, i32) {
    %c0_i32 = arith.constant 0 : i32
    %c0_i32_0 = arith.constant 0 : i32
    %c0_i32_1 = arith.constant 0 : i32
    return %c0_i32, %c0_i32_0 : i32, i32
  }
  func.func @transform_3(%arg0: i32) -> (i32, i32) {
    %c0_i32 = arith.constant 0 : i32
    %c0_i32_0 = arith.constant 0 : i32
    %c0_i32_1 = arith.constant 0 : i32
    return %c0_i32, %c0_i32_0 : i32, i32
  }
  func.func @transform_4(%arg0: i32) -> (i32, i32) {
    %c0_i32 = arith.constant 0 : i32
    %c0_i32_0 = arith.constant 0 : i32
    %c0_i32_1 = arith.constant 0 : i32
    return %c0_i32, %c0_i32_0 : i32, i32
  }
  func.func @transform_5(%arg0: i32) -> (i32, i32) {
    %c0_i32 = arith.constant 0 : i32
    %c0_i32_0 = arith.constant 0 : i32
    %c0_i32_1 = arith.constant 0 : i32
    return %c0_i32, %c0_i32_0 : i32, i32
  }
  func.func @transform_6(%arg0: i32) -> (i32, i32) {
    %c0_i32 = arith.constant 0 : i32
    %c0_i32_0 = arith.constant 0 : i32
    %c0_i32_1 = arith.constant 0 : i32
    return %c0_i32, %c0_i32_0 : i32, i32
  }
  func.func @transform_7(%arg0: i32) -> (i32, i32, i32) {
    %c0_i32 = arith.constant 0 : i32
    %c0_i32_0 = arith.constant 0 : i32
    %c0_i32_1 = arith.constant 0 : i32
    return %arg0, %c0_i32, %c0_i32_0 : i32, i32, i32
  }
}

</mosaic_0001>

<bundles_post_ra>
// kernel: link_predictor.1
= control target key start
LH: loop header
LB: loop body
LE: loop exit
PB: predicated region body
PF: predicated region fallthrough
CT: control target
= control target key end

     0   :  { %s1368_s0 = inlined_call_operand.vmem [shape: bf16[200,64], index: 0, kind: input, shape index: {}]   ;;  %s1369_s1 = inlined_call_operand.vmem [shape: bf16[32,32], index: 1, kind: input, shape index: {}]   ;;  %s1370_s2 = inlined_call_operand.vmem [shape: f32[1,32], index: 2, kind: input, shape index: {}]   ;;  %s1371_s3 = inlined_call_operand.vmem [shape: bf16[32,32], index: 3, kind: input, shape index: {}]   ;;  %s1372_s4 = inlined_call_operand.vmem [shape: f32[1,32], index: 4, kind: input, shape index: {}]   ;;  %s1373_s5 = inlined_call_operand.vmem [shape: f32[1,32], index: 5, kind: input, shape index: {}]   ;;  %s1374_s6 = inlined_call_operand.<no memory space> [shape: f32[1,1], index: 6, kind: input, shape index: {}]   ;;  %s1375_s7 = inlined_call_operand.hbm [shape: f32[1,1,200], index: 7, kind: output, shape index: {}]  }
   0x1   :  { %v12_v0 = vstv %s1374_s6 }
   0x2   :  { %13 = vst [vmem:[#allocation2] sm:$0x1] %v12_v0 }
   0x3   :  { %v1025_v1 = vld [vmem:[%s1368_s0] sm:$0xff]   ;;  %v1030_v2 = vld [vmem:[%s1368_s0 + $0x10] sm:$0xff]   ;;  %v1042_v6 = vld [vmem:[%s1368_s0 + $0x8] sm:$0xff]  }
   0x4   :  { %v814_v3 = vunpack.c.l.bf16 %v1025_v1  ;;  %v815_v4 = vunpack.c.h.bf16 %v1025_v1  ;;  %v1037_v5 = vld [vmem:[%s1368_s0 + $0x20] sm:$0xff]   ;;  %v822_v7 = vunpack.c.l.bf16 %v1030_v2  ;;  %v823_v8 = vunpack.c.h.bf16 %v1030_v2  ;;  %v1049_v9 = vld [vmem:[%s1368_s0 + $0x18] sm:$0xff]   ;;  %v809_v10 = vld [vmem:[%s1369_s1 + $0x8] sm:$0xff] }
   0x5   :  { %v830_v12 = vunpack.c.l.bf16 %v1037_v5  ;;  %v831_v13 = vunpack.c.h.bf16 %v1037_v5 }
   0x6   :  { %v878_v11 = vpack.i.bf16 %v815_v4, %v814_v3 }
   0x7   :  { %14 = vsyncpa [#allocation4], 0  ;;  %v888_v14 = vpack.i.bf16 %v823_v8, %v822_v7  ;;  %v1067_v15 = vld [vmem:[%s1368_s0 + $0x28] sm:$0xff]   ;;  %284 = vmatpush.bf16.msra.mxu0 %v809_v10  ;;  %871 = vmatpush.bf16.msra.mxu3 %v809_v10  ;;  %s976_s16 = smov 96   ;;  %v818_v16 = vunpack.c.l.bf16 %v1042_v6  ;;  %v819_v17 = vunpack.c.h.bf16 %v1042_v6  ;;  %v898_v18 = vpack.i.bf16 %v831_v13, %v830_v12  ;;  %v1089_v25 = vld [vmem:[%s1368_s0 + $0x30] sm:$0xff]   ;;  %s728_s17 = sshll.u32 %s1375_s7, 4  ;;  %s729_s17 = int_to_ptr.hbm [resolvable:$true] %s728_s17 }
   0x8   :  { %879 = vrot.lane.b32.xlu0 %v878_v11, %s976_s16  ;;  %v826_v19 = vunpack.c.l.bf16 %v1049_v9  ;;  %v827_v20 = vunpack.c.h.bf16 %v1049_v9  ;;  %v834_v21 = vunpack.c.l.bf16 %v1067_v15  ;;  %v835_v22 = vunpack.c.h.bf16 %v1067_v15  ;;  %v1098_v27 = vld [vmem:[%s1368_s0 + $0x38] sm:$0xff]   ;;  %v808_v34 = vld [vmem:[%s1369_s1] sm:$0xff]  ;;  %v1123_v35 = vld [vmem:[%s1368_s0 + $0x48] sm:$0xff]  }
   0x9   :  { %889 = vrot.lane.b32.xlu1 %v888_v14, %s976_s16  ;;  %899 = vrot.lane.b32.xlu2 %v898_v18, %s976_s16  ;;  %v883_v23 = vpack.i.bf16 %v819_v17, %v818_v16  ;;  %v838_v28 = vunpack.c.l.bf16 %v1089_v25  ;;  %v839_v29 = vunpack.c.h.bf16 %v1089_v25  ;;  %v842_v30 = vunpack.c.l.bf16 %v1098_v27  ;;  %v1135_v39 = vld [vmem:[%s1368_s0 + $0x40] sm:$0xff]   ;;  %v1144_v43 = vld [vmem:[%s1368_s0 + $0x50] sm:$0xff]  }
   0xa   :  { %v893_v24 = vpack.i.bf16 %v827_v20, %v826_v19  ;;  %v903_v26 = vpack.i.bf16 %v835_v22, %v834_v21  ;;  %v843_v31 = vunpack.c.h.bf16 %v1098_v27  ;;  %v850_v36 = vunpack.c.l.bf16 %v1123_v35  ;;  %v1167_v1 = vld [vmem:[%s1368_s0 + $0x58] sm:$0xff]   ;;  %v1179_v2 = vld [vmem:[%s1368_s0 + $0x60] sm:$0xf]  ;;  %v811_v25 = vld [vmem:[%s1371_s3 + $0x8] sm:$0xff] }
   0xb   :  { %v908_v32 = vpack.i.bf16 %v839_v29, %v838_v28  ;;  %285 = vmatpush.bf16.msra.mxu0 %v808_v34  ;;  %872 = vmatpush.bf16.msra.mxu3 %v808_v34  ;;  %v851_v37 = vunpack.c.h.bf16 %v1123_v35  ;;  %v846_v40 = vunpack.c.l.bf16 %v1135_v39  ;;  %v847_v41 = vunpack.c.h.bf16 %v1135_v39 }
   0xc   :  { %v913_v33 = vpack.i.bf16 %v843_v31, %v842_v30  ;;  %v854_v44 = vunpack.c.l.bf16 %v1144_v43  ;;  %v855_v45 = vunpack.c.h.bf16 %v1144_v43  ;;  %vm238_vm0 = vcmask 261120   ;;  %454 = vmatpush.bf16.msra.mxu1 %v811_v25  ;;  %873 = vmatpush.bf16.msra.mxu2 %v811_v25  ;;  %v1237_v43 = vld [vmem:[%s1370_s2] ss:$0 sm:$0xff] }
   0xd   :  { %v923_v38 = vpack.i.bf16 %v851_v37, %v850_v36  ;;  %v918_v42 = vpack.i.bf16 %v847_v41, %v846_v40  ;;  %vm713_vm9 = vcmask 1040384  }
   0xe   :  { %v928_v46 = vpack.i.bf16 %v855_v45, %v854_v44 }
  0x10   :  { %884 = vrot.lane.b32.xlu0 %v883_v23, %s976_s16 }
  0x11   :  { %894 = vrot.lane.b32.xlu1 %v893_v24, %s976_s16  ;;  %904 = vrot.lane.b32.xlu2 %v903_v26, %s976_s16 }
  0x18   :  { %909 = vrot.lane.b32.xlu0 %v908_v32, %s976_s16 }
  0x19   :  { %914 = vrot.lane.b32.xlu1 %v913_v33, %s976_s16  ;;  %919 = vrot.lane.b32.xlu2 %v918_v42, %s976_s16 }
  0x20   :  { %924 = vrot.lane.b32.xlu0 %v923_v38, %s976_s16 }
  0x21   :  { %929 = vrot.lane.b32.xlu1 %v928_v46, %s976_s16 }
  0x63   :  { %v900_v18 = vpop.permute.xlu2 %899 }
  0x64   :  { %v902_v23 = vunpack.i.h.bf16 %v900_v18  ;;  %v901_v24 = vunpack.i.l.bf16 %v900_v18 }
  0x66   :  { %v189_v26 = vmul.f32 %v902_v23, %v831_v13  ;;  %v188_v32 = vmul.f32 %v901_v24, %v830_v12 }
  0x68   :  { %v209_v33 = vpack.c.bf16 %v189_v26, %v188_v32 }
  0x6b   :  { %v905_v34 = vpop.permute.xlu2 %904 }
  0x6c   :  { %v906_v38 = vunpack.i.l.bf16 %v905_v34 }
  0x73   :  { %v920_v42 = vpop.permute.xlu2 %919 }
  0x7a   :  { %v880_v47 = vpop.permute.xlu0 %879 }
  0x7b   :  { %v882_v48 = vunpack.i.h.bf16 %v880_v47  ;;  %v881_v49 = vunpack.i.l.bf16 %v880_v47  ;;  %v890_v59 = vpop.permute.xlu1 %889  ;;  %v922_v47 = vunpack.i.h.bf16 %v920_v42 }
  0x7c   :  { %v892_v60 = vunpack.i.h.bf16 %v890_v59  ;;  %v891_v61 = vunpack.i.l.bf16 %v890_v59 }
  0x7d   :  { %v181_v50 = vmul.f32 %v882_v48, %v815_v4  ;;  %v180_v51 = vmul.f32 %v881_v49, %v814_v3  ;;  %v858_v3 = vunpack.c.l.bf16 %v1167_v1  ;;  %v859_v4 = vunpack.c.h.bf16 %v1167_v1 }
  0x7e   :  { %v185_v62 = vmul.f32 %v892_v60, %v823_v8  ;;  %v184_v63 = vmul.f32 %v891_v61, %v822_v7  ;;  %v79_v8 = vunpack.c.l.bf16 %v1179_v2  ;;  %v921_v48 = vunpack.i.l.bf16 %v920_v42 }
  0x7f   :  { %v205_v52 = vpack.c.bf16 %v181_v50, %v180_v51  ;;  %v933_v6 = vpack.i.bf16 %v859_v4, %v858_v3  ;;  %v197_v13 = vmul.f32 %v922_v47, %v847_v41 }
  0x80   :  { %v207_v0 = vpack.c.bf16 %v185_v62, %v184_v63  ;;  %153 = vrot.lane.b32.xlu0 %v79_v8, %s976_s16  ;;  %v196_v5 = vmul.f32 %v921_v48, %v846_v40 }
  0x81   :  { %745 = vmatmul.msk.bf16.vlgmr.msra.gmra.mxu0 %vm238_vm0, %v205_v52  ;;  %934 = vrot.lane.b32.xlu2 %v933_v6, %s976_s16 }
  0x82   :  { %v885_v53 = vpop.permute.xlu0 %884  ;;  %v213_v49 = vpack.c.bf16 %v197_v13, %v196_v5 }
  0x83   :  { %v887_v54 = vunpack.i.h.bf16 %v885_v53  ;;  %v886_v55 = vunpack.i.l.bf16 %v885_v53  ;;  %v895_v7 = vpop.permute.xlu1 %894 }
  0x84   :  { %v897_v10 = vunpack.i.h.bf16 %v895_v7  ;;  %v896_v11 = vunpack.i.l.bf16 %v895_v7  ;;  %753 = vmatmul.msk.bf16.vlgmr.msra.gmra.mxu3 %vm238_vm0, %v213_v49 }
  0x85   :  { %v183_v56 = vmul.f32 %v887_v54, %v819_v17  ;;  %v182_v57 = vmul.f32 %v886_v55, %v818_v16 }
  0x86   :  { %v187_v14 = vmul.f32 %v897_v10, %v827_v20  ;;  %v186_v16 = vmul.f32 %v896_v11, %v826_v19  ;;  %v907_v20 = vunpack.i.h.bf16 %v905_v34  ;;  %v190_v19 = vmul.f32 %v906_v38, %v834_v21 }
  0x87   :  { %v206_v58 = vpack.c.bf16 %v183_v56, %v182_v57 }
  0x88   :  { %v208_v17 = vpack.c.bf16 %v187_v14, %v186_v16  ;;  %v191_v9 = vmul.f32 %v907_v20, %v835_v22 }
  0x8a   :  { %v210_v46 = vpack.c.bf16 %v191_v9, %v190_v19  ;;  %v910_v12 = vpop.permute.xlu0 %909 }
  0x8b   :  { %v912_v50 = vunpack.i.h.bf16 %v910_v12  ;;  %v911_v51 = vunpack.i.l.bf16 %v910_v12  ;;  %v915_v55 = vpop.permute.xlu1 %914 }
  0x8d   :  { %v193_v15 = vmul.f32 %v912_v50, %v839_v29  ;;  %v192_v21 = vmul.f32 %v911_v51, %v838_v28  ;;  %v917_v28 = vunpack.i.h.bf16 %v915_v55  ;;  %v916_v29 = vunpack.i.l.bf16 %v915_v55 }
  0x8f   :  { %v211_v53 = vpack.c.bf16 %v193_v15, %v192_v21  ;;  %v195_v35 = vmul.f32 %v917_v28, %v843_v31 }
  0x91   :  { %746 = vmatmul.msk.bf16.gmra.mxu0 %vm238_vm0, %v206_v58 }
  0x92   :  { %v925_v22 = vpop.permute.xlu0 %924 }
  0x93   :  { %v927_v52 = vunpack.i.h.bf16 %v925_v22  ;;  %v926_v41 = vunpack.i.l.bf16 %v925_v22  ;;  %v930_v56 = vpop.permute.xlu1 %929 }
  0x94   :  { %v932_v57 = vunpack.i.h.bf16 %v930_v56  ;;  %v931_v58 = vunpack.i.l.bf16 %v930_v56 }
  0x95   :  { %v199_v39 = vmul.f32 %v927_v52, %v851_v37  ;;  %v198_v40 = vmul.f32 %v926_v41, %v850_v36  ;;  %v810_v37 = vld [vmem:[%s1371_s3] sm:$0xff]  ;;  %v194_v36 = vmul.f32 %v916_v29, %v842_v30 }
  0x96   :  { %455 = vmatpush.bf16.msra.mxu1 %v810_v37  ;;  %874 = vmatpush.bf16.msra.mxu2 %v810_v37  ;;  %v201_v60 = vmul.f32 %v932_v57, %v855_v45  ;;  %v200_v61 = vmul.f32 %v931_v58, %v854_v44 }
  0x97   :  { %v214_v54 = vpack.c.bf16 %v199_v39, %v198_v40  ;;  %v212_v59 = vpack.c.bf16 %v195_v35, %v194_v36 }
  0x98   :  { %v215_v62 = vpack.c.bf16 %v201_v60, %v200_v61 }
  0x99   :  { %754 = vmatmul.msk.bf16.gmra.mxu3 %vm238_vm0, %v214_v54 }
  0xa1   :  { %747 = vmatmul.msk.bf16.gmra.mxu0 %vm238_vm0, %v207_v0 }
  0xa9   :  { %755 = vmatmul.msk.bf16.gmra.mxu3 %vm238_vm0, %v215_v62 }
  0xb1   :  { %748 = vmatmul.msk.bf16.gmra.mxu0 %vm238_vm0, %v208_v17 }
  0xc1   :  { %749 = vmatmul.msk.bf16.gmra.mxu0 %vm238_vm0, %v209_v33 }
  0xd1   :  { %750 = vmatmul.msk.bf16.gmra.mxu0 %vm238_vm0, %v210_v46 }
  0xdb   :  { %v935_v31 = vpop.permute.xlu2 %934 }
  0xdc   :  { %v937_v27 = vunpack.i.h.bf16 %v935_v31  ;;  %v936_v30 = vunpack.i.l.bf16 %v935_v31 }
  0xde   :  { %v203_v0 = vmul.f32 %v937_v27, %v859_v4  ;;  %v202_v6 = vmul.f32 %v936_v30, %v858_v3 }
  0xe0   :  { %v216_v44 = vpack.c.bf16 %v203_v0, %v202_v6 }
  0xe1   :  { %751 = vmatmul.msk.bf16.gmra.mxu0 %vm238_vm0, %v211_v53 }
  0xe2   :  { %756 = vmatmul.msk.bf16.gmra.mxu3 %vm238_vm0, %v216_v44 }
  0xf1   :  { %752 = vmatmul.msk.bf16.gmra.mxu0 %vm238_vm0, %v212_v59 }
  0xf2   :  { %v154_v17 = vpop.permute.xlu0 %153 }
  0xf3   :  { %v204_v23 = vmul.f32 %v154_v17, %v79_v8 }
  0xf5   :  { %v217_v32 = vpack.c.bf16 %v204_v23, %v204_v23 }
  0xf7   :  { %757 = vmatmul.msk.bf16.gmra.mxu3 %vm238_vm0, %v217_v32 }
  0xfe   :  { %v287_v63 = vpop.f32.mrf.mxu0 }
  0xff   :  { %v288_v45 = vadd.f32 %v1237_v43, %v287_v63 }
 0x101   :  { %v351_v11 = vmax.f32 %v288_v45, 0.0 }
 0x106   :  { %v289_v7 = vpop.f32.mrf.mxu0 }
 0x107   :  { %v290_v10 = vadd.f32 %v1237_v43, %v289_v7  ;;  %v327_v40 = vpop.f32.mrf.mxu3 }
 0x108   :  { %v328_v7 = vadd.f32 %v1237_v43, %v327_v40 }
 0x109   :  { %v352_v14 = vmax.f32 %v290_v10, 0.0 }
 0x10b   :  { %v376_v16 = vpack.c.bf16 %v352_v14, %v351_v11  ;;  %v367_v11 = vmax.f32 %v328_v7, 0.0 }
 0x10d   :  { %766 = vmatmul.msk.bf16.vlgmr.msra.gmra.mxu1 %vm238_vm0, %v376_v16 }
 0x10e   :  { %v292_v1 = vpop.f32.mrf.mxu0 }
 0x10f   :  { %v293_v3 = vadd.f32 %v1237_v43, %v292_v1  ;;  %v329_v37 = vpop.f32.mrf.mxu3 }
 0x110   :  { %v330_v10 = vadd.f32 %v1237_v43, %v329_v37 }
 0x111   :  { %v353_v24 = vmax.f32 %v293_v3, 0.0 }
 0x112   :  { %v368_v14 = vmax.f32 %v330_v10, 0.0 }
 0x114   :  { %v384_v1 = vpack.c.bf16 %v368_v14, %v367_v11 }
 0x116   :  { %v294_v4 = vpop.f32.mrf.mxu0 }
 0x117   :  { %v295_v18 = vadd.f32 %v1237_v43, %v294_v4 }
 0x119   :  { %v354_v26 = vmax.f32 %v295_v18, 0.0 }
 0x11b   :  { %v377_v33 = vpack.c.bf16 %v354_v26, %v353_v24 }
 0x11c   :  { %v332_v56 = vpop.f32.mrf.mxu3 }
 0x11d   :  { %767 = vmatmul.msk.bf16.gmra.mxu1 %vm238_vm0, %v377_v33  ;;  %v333_v4 = vadd.f32 %v1237_v43, %v332_v56 }
 0x11e   :  { %v297_v34 = vpop.f32.mrf.mxu0 }
 0x11f   :  { %v298_v20 = vadd.f32 %v1237_v43, %v297_v34  ;;  %v369_v24 = vmax.f32 %v333_v4, 0.0 }
 0x121   :  { %v355_v19 = vmax.f32 %v298_v20, 0.0 }
 0x124   :  { %v334_v62 = vpop.f32.mrf.mxu3 }
 0x125   :  { %v335_v17 = vadd.f32 %v1237_v43, %v334_v62 }
 0x126   :  { %v299_v38 = vpop.f32.mrf.mxu0 }
 0x127   :  { %v300_v9 = vadd.f32 %v1237_v43, %v299_v38  ;;  %v370_v26 = vmax.f32 %v335_v17, 0.0 }
 0x129   :  { %v356_v42 = vmax.f32 %v300_v9, 0.0  ;;  %v385_v32 = vpack.c.bf16 %v370_v26, %v369_v24 }
 0x12b   :  { %v378_v46 = vpack.c.bf16 %v356_v42, %v355_v19 }
 0x12c   :  { %v337_v63 = vpop.f32.mrf.mxu3 }
 0x12d   :  { %768 = vmatmul.msk.bf16.gmra.mxu1 %vm238_vm0, %v378_v46  ;;  %v338_v20 = vadd.f32 %v1237_v43, %v337_v63 }
 0x12e   :  { %v302_v2 = vpop.f32.mrf.mxu0 }
 0x12f   :  { %v303_v8 = vadd.f32 %v1237_v43, %v302_v2  ;;  %v371_v19 = vmax.f32 %v338_v20, 0.0 }
 0x131   :  { %v357_v13 = vmax.f32 %v303_v8, 0.0 }
 0x134   :  { %v339_v45 = vpop.f32.mrf.mxu3 }
 0x135   :  { %v340_v38 = vadd.f32 %v1237_v43, %v339_v45 }
 0x136   :  { %v304_v47 = vpop.f32.mrf.mxu0 }
 0x137   :  { %v305_v48 = vadd.f32 %v1237_v43, %v304_v47  ;;  %v372_v42 = vmax.f32 %v340_v38, 0.0 }
 0x139   :  { %v358_v5 = vmax.f32 %v305_v48, 0.0  ;;  %v386_v2 = vpack.c.bf16 %v372_v42, %v371_v19 }
 0x13b   :  { %v379_v12 = vpack.c.bf16 %v358_v5, %v357_v13 }
 0x13d   :  { %769 = vmatmul.msk.bf16.gmra.mxu1 %vm238_vm0, %v379_v12 }
 0x13e   :  { %v307_v49 = vpop.f32.mrf.mxu0 }
 0x13f   :  { %v308_v50 = vadd.f32 %v1237_v43, %v307_v49 }
 0x141   :  { %v359_v15 = vmax.f32 %v308_v50, 0.0 }
 0x146   :  { %v309_v51 = vpop.f32.mrf.mxu0 }
 0x147   :  { %v310_v22 = vadd.f32 %v1237_v43, %v309_v51 }
 0x149   :  { %v360_v21 = vmax.f32 %v310_v22, 0.0 }
 0x14b   :  { %v380_v52 = vpack.c.bf16 %v360_v21, %v359_v15 }
 0x14d   :  { %770 = vmatmul.msk.bf16.gmra.mxu1 %vm238_vm0, %v380_v52 }
 0x14e   :  { %v312_v41 = vpop.f32.mrf.mxu0 }
 0x14f   :  { %v313_v53 = vadd.f32 %v1237_v43, %v312_v41 }
 0x151   :  { %v361_v55 = vmax.f32 %v313_v53, 0.0 }
 0x156   :  { %v314_v39 = vpop.f32.mrf.mxu0 }
 0x157   :  { %v315_v54 = vadd.f32 %v1237_v43, %v314_v39 }
 0x159   :  { %v362_v25 = vmax.f32 %v315_v54, 0.0 }
 0x15b   :  { %v381_v28 = vpack.c.bf16 %v362_v25, %v361_v55  ;;  %v1292_v55 = vld [vmem:[%s1372_s4] ss:$0 sm:$0xff] }
 0x15d   :  { %771 = vmatmul.msk.bf16.gmra.mxu1 %vm238_vm0, %v381_v28 }
 0x15e   :  { %v317_v29 = vpop.f32.mrf.mxu0 }
 0x15f   :  { %v318_v35 = vadd.f32 %v1237_v43, %v317_v29 }
 0x161   :  { %v363_v58 = vmax.f32 %v318_v35, 0.0 }
 0x165   :  { %v342_v3 = vpop.f32.mrf.mxu3 }
 0x166   :  { %v319_v36 = vpop.f32.mrf.mxu0  ;;  %v343_v47 = vadd.f32 %v1237_v43, %v342_v3 }
 0x167   :  { %v320_v57 = vadd.f32 %v1237_v43, %v319_v36 }
 0x168   :  { %v373_v13 = vmax.f32 %v343_v47, 0.0 }
 0x169   :  { %v364_v59 = vmax.f32 %v320_v57, 0.0 }
 0x16b   :  { %v382_v60 = vpack.c.bf16 %v364_v59, %v363_v58 }
 0x16d   :  { %772 = vmatmul.msk.bf16.gmra.mxu1 %vm238_vm0, %v382_v60  ;;  %v344_v23 = vpop.f32.mrf.mxu3 }
 0x16e   :  { %v322_v61 = vpop.f32.mrf.mxu0  ;;  %v345_v48 = vadd.f32 %v1237_v43, %v344_v23 }
 0x16f   :  { %v323_v31 = vadd.f32 %v1237_v43, %v322_v61 }
 0x170   :  { %v374_v5 = vmax.f32 %v345_v48, 0.0 }
 0x171   :  { %v365_v0 = vmax.f32 %v323_v31, 0.0 }
 0x172   :  { %v387_v12 = vpack.c.bf16 %v374_v5, %v373_v13 }
 0x176   :  { %v324_v27 = vpop.f32.mrf.mxu0 }
 0x177   :  { %v325_v30 = vadd.f32 %v1237_v43, %v324_v27 }
 0x179   :  { %v366_v6 = vmax.f32 %v325_v30, 0.0 }
 0x17a   :  { %v347_v34 = vpop.f32.mrf.mxu3 }
 0x17b   :  { %v383_v44 = vpack.c.bf16 %v366_v6, %v365_v0  ;;  %v348_v50 = vadd.f32 %v1237_v43, %v347_v34 }
 0x17d   :  { %773 = vmatmul.msk.bf16.vlgmr.msra.gmra.mxu2 %vm238_vm0, %v383_v44  ;;  %v375_v51 = vmax.f32 %v348_v50, 0.0 }
 0x17f   :  { %v388_v15 = vpack.c.bf16 %v375_v51, %v375_v51 }
 0x182   :  { %v349_v9 = vpop.f32.mrf.mxu3 }
 0x18a   :  { %v1269_v16 = vpop.f32.mrf.mxu1 }
 0x18b   :  { %v458_v19 = vadd.f32 %v1292_v55, %v1269_v16 }
 0x18d   :  { %774 = vmatmul.msk.bf16.gmra.mxu2 %vm238_vm0, %v384_v1 }
 0x192   :  { %v1274_v18 = vpop.f32.mrf.mxu1 }
 0x193   :  { %v460_v20 = vadd.f32 %v1292_v55, %v1274_v18 }
 0x195   :  { %v522_v42 = vmax.f32 %v460_v20, 0.0 }
 0x19a   :  { %v1277_v33 = vpop.f32.mrf.mxu1 }
 0x19d   :  { %775 = vmatmul.msk.bf16.gmra.mxu2 %vm238_vm0, %v385_v32  ;;  %v463_v32 = vadd.f32 %v1292_v55, %v1277_v33  ;;  %v546_v33 = vld [vmem:[%s1373_s5] sm:$0x1]  ;;  %s978_s5 = smov [#allocation3]  }
 0x19e   :  { %s726_s14 = sshll.u32 %s978_s5, 4  ;;  %s727_s14 = int_to_ptr.vmem [resolvable:$true] %s726_s14 }
 0x19f   :  { %v523_v38 = vmax.f32 %v463_v32, 0.0 }
 0x1a2   :  { %v1281_v46 = vpop.f32.mrf.mxu1 }
 0x1a3   :  { %v465_v23 = vadd.f32 %v1292_v55, %v1281_v46  ;;  %v521_v46 = vmax.f32 %v458_v19, 0.0 }
 0x1a5   :  { %v524_v34 = vmax.f32 %v465_v23, 0.0 }
 0x1aa   :  { %v467_v8 = vpop.f32.mrf.mxu1 }
 0x1ab   :  { %v468_v4 = vadd.f32 %v1292_v55, %v467_v8 }
 0x1ad   :  { %776 = vmatmul.msk.bf16.gmra.mxu2 %vm238_vm0, %v386_v2  ;;  %v525_v24 = vmax.f32 %v468_v4, 0.0  ;;  %v716_v4 = vlaneseq }
 0x1af   :  { %vm718_vm10 = vcmp.lt.s32.totalorder %v716_v4, 200 }
 0x1b2   :  { %v469_v49 = vpop.f32.mrf.mxu1 }
 0x1b3   :  { %v470_v14 = vadd.f32 %v1292_v55, %v469_v49  ;;  %v977_v49 = vmov 0  }
 0x1b4   :  { %938 = vset.pattern.permute.xlu1 %v977_v49  ;;  %939 = vset.pattern.permute.xlu0 %v977_v49 }
 0x1b5   :  { %v526_v17 = vmax.f32 %v470_v14, 0.0 }
 0x1ba   :  { %v472_v22 = vpop.f32.mrf.mxu1 }
 0x1bb   :  { %v473_v10 = vadd.f32 %v1292_v55, %v472_v22 }
 0x1bd   :  { %777 = vmatmul.msk.bf16.gmra.mxu2 %vm238_vm0, %v387_v12  ;;  %v527_v1 = vmax.f32 %v473_v10, 0.0  ;;  %v547_v12 = vld [vmem:[#allocation2] sm:$0x1] }
 0x1be   :  { %550 = vperm.xlu1 %938, %v547_v12  }
 0x1c2   :  { %v474_v21 = vpop.f32.mrf.mxu1 }
 0x1c3   :  { %v475_v44 = vadd.f32 %v1292_v55, %v474_v21 }
 0x1c5   :  { %v528_v11 = vmax.f32 %v475_v44, 0.0 }
 0x1ca   :  { %v477_v52 = vpop.f32.mrf.mxu1 }
 0x1cb   :  { %v478_v0 = vadd.f32 %v1292_v55, %v477_v52 }
 0x1cd   :  { %778 = vmatmul.msk.bf16.gmra.mxu2 %vm238_vm0, %v388_v15  ;;  %v529_v45 = vmax.f32 %v478_v0, 0.0 }
 0x1d2   :  { %v479_v41 = vpop.f32.mrf.mxu1 }
 0x1d3   :  { %v480_v27 = vadd.f32 %v1292_v55, %v479_v41 }
 0x1d5   :  { %v530_v6 = vmax.f32 %v480_v27, 0.0 }
 0x1da   :  { %v482_v53 = vpop.f32.mrf.mxu1 }
 0x1db   :  { %v483_v62 = vadd.f32 %v1292_v55, %v482_v53 }
 0x1dd   :  { %v531_v30 = vmax.f32 %v483_v62, 0.0 }
 0x1e2   :  { %v484_v39 = vpop.f32.mrf.mxu1 }
 0x1e3   :  { %v485_v59 = vadd.f32 %v1292_v55, %v484_v39 }
 0x1e5   :  { %v532_v31 = vmax.f32 %v485_v59, 0.0 }
 0x1ea   :  { %v487_v54 = vpop.f32.mrf.mxu1 }
 0x1eb   :  { %v488_v57 = vadd.f32 %v1292_v55, %v487_v54 }
 0x1ed   :  { %v533_v60 = vmax.f32 %v488_v57, 0.0 }
 0x1f2   :  { %v489_v37 = vpop.f32.mrf.mxu1 }
 0x1f3   :  { %v490_v35 = vadd.f32 %v1292_v55, %v489_v37 }
 0x1f5   :  { %v534_v58 = vmax.f32 %v490_v35, 0.0 }
 0x200   :  { %v492_v40 = vpop.f32.mrf.mxu2 }
 0x201   :  { %v493_v28 = vadd.f32 %v1292_v55, %v492_v40 }
 0x203   :  { %v535_v36 = vmax.f32 %v493_v28, 0.0 }
 0x208   :  { %v494_v25 = vpop.f32.mrf.mxu2 }
 0x209   :  { %v495_v43 = vadd.f32 %v1292_v55, %v494_v25 }
 0x20b   :  { %v536_v29 = vmax.f32 %v495_v43, 0.0 }
 0x20d   :  { %779 = vmatpush.xpose.msk.msrb.mxu2 %vm238_vm0, %v536_v29 }
 0x210   :  { %v1298_v56 = vpop.f32.mrf.mxu2 }
 0x211   :  { %780 = vmatpush.xpose.msk.msrb.mxu2 %vm238_vm0, %v535_v36  ;;  %v498_v54 = vadd.f32 %v1292_v55, %v1298_v56 }
 0x213   :  { %v537_v43 = vmax.f32 %v498_v54, 0.0 }
 0x215   :  { %781 = vmatpush.xpose.msk.msrb.mxu2 %vm238_vm0, %v534_v58 }
 0x218   :  { %v1304_v61 = vpop.f32.mrf.mxu2 }
 0x219   :  { %782 = vmatpush.xpose.msk.msrb.mxu2 %vm238_vm0, %v533_v60  ;;  %v500_v39 = vadd.f32 %v1292_v55, %v1304_v61 }
 0x21b   :  { %v538_v25 = vmax.f32 %v500_v39, 0.0 }
 0x21d   :  { %783 = vmatpush.xpose.msk.msrb.mxu2 %vm238_vm0, %v532_v31 }
 0x220   :  { %v502_v63 = vpop.f32.mrf.mxu2 }
 0x221   :  { %784 = vmatpush.xpose.msk.msrb.mxu2 %vm238_vm0, %v531_v30  ;;  %v503_v41 = vadd.f32 %v1292_v55, %v502_v63 }
 0x223   :  { %v539_v40 = vmax.f32 %v503_v41, 0.0 }
 0x225   :  { %785 = vmatpush.xpose.msk.msrb.mxu2 %vm238_vm0, %v530_v6 }
 0x228   :  { %v504_v7 = vpop.f32.mrf.mxu2 }
 0x229   :  { %786 = vmatpush.xpose.msk.msrb.mxu2 %vm238_vm0, %v529_v45  ;;  %v505_v21 = vadd.f32 %v1292_v55, %v504_v7 }
 0x22b   :  { %v540_v53 = vmax.f32 %v505_v21, 0.0 }
 0x22d   :  { %787 = vmatpush.xpose.msk.msrb.mxu2 %vm238_vm0, %v528_v11 }
 0x230   :  { %v507_v3 = vpop.f32.mrf.mxu2  ;;  %v551_v28 = vpop.permute.xlu1 %550 }
 0x231   :  { %788 = vmatpush.xpose.msk.msrb.mxu2 %vm238_vm0, %v527_v1  ;;  %v508_v22 = vadd.f32 %v1292_v55, %v507_v3  ;;  %v553_v29 = vperm.slane %v551_v28, 0 }
 0x233   :  { %v541_v52 = vmax.f32 %v508_v22, 0.0 }
 0x235   :  { %789 = vmatpush.xpose.msk.msrb.mxu2 %vm238_vm0, %v526_v17 }
 0x238   :  { %v509_v26 = vpop.f32.mrf.mxu2 }
 0x239   :  { %790 = vmatpush.xpose.msk.msrb.mxu2 %vm238_vm0, %v525_v24  ;;  %v510_v50 = vadd.f32 %v1292_v55, %v509_v26 }
 0x23b   :  { %v542_v15 = vmax.f32 %v510_v50, 0.0 }
 0x23d   :  { %791 = vmatpush.xpose.msk.msrb.mxu2 %vm238_vm0, %v524_v34 }
 0x240   :  { %v512_v9 = vpop.f32.mrf.mxu2 }
 0x241   :  { %792 = vmatpush.xpose.msk.msrb.mxu2 %vm238_vm0, %v523_v38  ;;  %v513_v16 = vadd.f32 %v1292_v55, %v512_v9 }
 0x243   :  { %v543_v51 = vmax.f32 %v513_v16, 0.0 }
 0x245   :  { %793 = vmatpush.xpose.msk.msrb.mxu2 %vm238_vm0, %v522_v42 }
 0x248   :  { %v514_v2 = vpop.f32.mrf.mxu2 }
 0x249   :  { %794 = vmatpush.xpose.msk.msrb.mxu2 %vm238_vm0, %v521_v46  ;;  %v515_v47 = vadd.f32 %v1292_v55, %v514_v2 }
 0x24b   :  { %v544_v13 = vmax.f32 %v515_v47, 0.0 }
 0x24c   :  { %795 = vmatmul.msk.f32.vlgmr.msrb.gmra.mxu2 %vm238_vm0, %v546_v33 }
 0x250   :  { %v517_v18 = vpop.f32.mrf.mxu2 }
 0x251   :  { %v518_v8 = vadd.f32 %v1292_v55, %v517_v18 }
 0x253   :  { %v545_v48 = vmax.f32 %v518_v8, 0.0 }
 0x255   :  { %796 = vmatpush.xpose.msk.msrb.mxu3 %vm238_vm0, %v545_v48 }
 0x258   :  { %v519_v5 = vpop.f32.mrf.mxu2 }
 0x259   :  { %797 = vmatpush.xpose.msk.msrb.mxu3 %vm238_vm0, %v544_v13 }
 0x25d   :  { %798 = vmatpush.xpose.msk.msrb.mxu3 %vm238_vm0, %v543_v51 }
 0x261   :  { %799 = vmatpush.xpose.msk.msrb.mxu3 %vm238_vm0, %v542_v15 }
 0x265   :  { %800 = vmatpush.xpose.msk.msrb.mxu3 %vm238_vm0, %v541_v52 }
 0x269   :  { %801 = vmatpush.xpose.msk.msrb.mxu3 %vm238_vm0, %v540_v53 }
 0x26d   :  { %802 = vmatpush.xpose.msk.msrb.mxu3 %vm238_vm0, %v539_v40 }
 0x271   :  { %803 = vmatpush.xpose.msk.msrb.mxu3 %vm238_vm0, %v538_v25 }
 0x275   :  { %804 = vmatpush.xpose.msk.msrb.mxu3 %vm238_vm0, %v537_v43 }
 0x278   :  { %805 = vmatmul.msk.f32.vlgmr.msrb.gmra.mxu3 %vm238_vm0, %v546_v33 }
 0x2cf   :  { %v649_v37 = vpop.f32.mrf.mxu2 }
 0x2d0   :  { %v650_v35 = vadd.f32 %v649_v37, %v553_v29 }
 0x2d2   :  { %v806_v36 = vmul.f32 -1.442695, %v650_v35 }
 0x2d4   :  { %942 = vpow2.f32 %v806_v36 }
 0x2da   :  { %v943_v57 = vpop.eup %942 }
 0x2db   :  { %v678_v59 = vadd.f32 1.0, %v943_v57 }
 0x2dd   :  { %944 = vrcp.f32 %v678_v59  ;;  %vm685_vm1 = vweird.f32 %v678_v59  ;;  %v689_v44 = vand.u32 2147483647, %v678_v59  ;;  %v691_v45 = vand.u32 2147483648, %v678_v59 }
 0x2df   :  { %v692_v17 = vor.u32 1.1754944e-38, %v691_v45  ;;  %vm690_vm7 = vcmp.eq.f32.partialorder %v689_v44, 8.507059e+37 }
 0x2e3   :  { %v945_v55 = vpop.eup %944 }
 0x2e4   :  { %v681_v31 = vmul.f32 %v945_v55, %v678_v59  ;;  %vm686_vm2 = vweird.f32 %v945_v55 }
 0x2e5   :  { %vm1359_vm4 = vmor %vm685_vm1, %vm686_vm2 }
 0x2e6   :  { %v682_v27 = vsub.f32 1.0, %v681_v31 }
 0x2e8   :  { %v683_v0 = vmul.f32 %v945_v55, %v682_v27 }
 0x2ea   :  { %v684_v10 = vadd.f32 %v945_v55, %v683_v0 }
 0x2ec   :  { %v688_v24 = vsel %vm1359_vm4, %v945_v55, %v684_v10 }
 0x2ed   :  { %v693_v20 = vsel %vm690_vm7, %v692_v17, %v688_v24 }
 0x2fb   :  { %v669_v58 = vpop.f32.mrf.mxu3 }
 0x2fc   :  { %v670_v60 = vadd.f32 %v669_v58, %v553_v29 }
 0x2fe   :  { %v807_v61 = vmul.f32 -1.442695, %v670_v60 }
 0x300   :  { %946 = vpow2.f32 %v807_v61 }
 0x306   :  { %v947_v56 = vpop.eup %946 }
 0x307   :  { %v679_v62 = vadd.f32 1.0, %v947_v56 }
 0x309   :  { %948 = vrcp.f32 %v679_v62  ;;  %v706_v7 = vand.u32 2147483648, %v679_v62  ;;  %v704_v14 = vand.u32 2147483647, %v679_v62  ;;  %vm700_vm5 = vweird.f32 %v679_v62 }
 0x30b   :  { %v707_v23 = vor.u32 1.1754944e-38, %v706_v7  ;;  %vm705_vm8 = vcmp.eq.f32.partialorder %v704_v14, 8.507059e+37 }
 0x30f   :  { %v949_v30 = vpop.eup %948 }
 0x310   :  { %v696_v63 = vmul.f32 %v949_v30, %v679_v62  ;;  %vm701_vm3 = vweird.f32 %v949_v30 }
 0x311   :  { %vm702_vm6 = vmor %vm700_vm5, %vm701_vm3 }
 0x312   :  { %v697_v6 = vsub.f32 1.0, %v696_v63 }
 0x314   :  { %v698_v11 = vmul.f32 %v949_v30, %v697_v6 }
 0x316   :  { %v699_v3 = vadd.f32 %v949_v30, %v698_v11 }
 0x318   :  { %v703_v26 = vsel %vm702_vm6, %v949_v30, %v699_v3 }
 0x319   :  { %v708_v32 = vsel %vm705_vm8, %v707_v23, %v703_v26 }
 0x31a   :  { %v712_v34 = vrot.slane %v708_v32, 7 }
 0x31c   :  { %v714_v38 = vsel %vm713_vm9, %v693_v20, %v712_v34 }
 0x31d   :  { %720 = vst.msk [vmem:[#allocation3] sm:$0x3] %vm718_vm10, %v714_v38 }
 0x31e   :  { %731 = dma.vmem_to_hbm [thread:$0]  %s727_s14, 32, %s729_s17, [#allocation4]  }
 0x31f   :  { %974 = dma.done.wait [#allocation4], 32  }
 0x320   :  { %975 = vsyncadd [#allocation4], 4294967264 }
 0x321   :  { %736 = vsyncpa [#allocation4], 1 }

</bundles_post_ra>
